<compile_context>
chip_gen: v5e
topology: v5e:2x2
jax: 0.10.0
libtpu: 0.0.40
codegen_flags: <defaults>
</compile_context>

<pallas_src>
import jax
import jax.numpy as jnp
from jax.experimental import pallas as pl
from jax.experimental.pallas import tpu as pltpu

# Default node-tile cap.  Multiple of every sublane tile (8/16/32) and of 128.
# Double-buffered footprint at TM=8192, K=118 (lane-padded to 128):
#   x: 2 x 4 MiB, out: 2 x 4 MiB, e: ~0.12 MiB  ->  ~16.2 MiB, set explicitly
#   via vmem_limit_bytes below (within physical VMEM on v5e/v6e/v7x).
_TM_MAX = 8192
# Legal second-to-last block-dim multiple for f32/bf16/int8 inputs.
_SUBLANE_MULTIPLE = 32


def _round_up(v: int, m: int) -> int:
    return (v + m - 1) // m * m


def _round_down(v: int, m: int) -> int:
    return (v // m) * m


def _atomic_energies_kernel(x_ref, e_ref, o_ref):
    # x_ref: (TM, K) node tile; e_ref: (K, 1) resident energy column;
    # o_ref: (TM, 1).  One narrow MXU matvec per tile; f32 accumulation is
    # exact for one-hot x and matches torch.matmul for general x.
    #
    # NOTE: partial last tiles read padding rows of x.  That is safe ONLY
    # because each output row depends solely on its own input row and
    # out-of-range output rows are never written back.  Do not add cross-row
    # reductions here without revisiting this.
    o_ref[...] = jnp.dot(
        x_ref[...], e_ref[...], preferred_element_type=jnp.float32
    ).astype(o_ref.dtype)


def atomic_energies_forward(
    x: jax.Array, atomic_energies: jax.Array, *, tile_m: int | None = None
) -> jax.Array:
    """x: [N, K] float, atomic_energies: [K] float -> [N] float32."""
    n, k = x.shape
    (k2,) = atomic_energies.shape
    assert k == k2, f"species mismatch: x has {k}, energies has {k2}"

    # --- Tile choice -------------------------------------------------------
    # Single full-extent block when N fits (always legal w.r.t. the (8,128)
    # rule); otherwise TM-row blocks with a partial last block.  User tile_m
    # is rounded down to a sublane-tile multiple so Mosaic lowering never
    # sees an illegal second-to-last block dim.
    if tile_m is None:
        tile_m = _TM_MAX
    tm = min(tile_m, n)
    if tm < n:
        tm = max(_round_down(tm, _SUBLANE_MULTIPLE), _SUBLANE_MULTIPLE)
        if tm >= n:
            tm = n  # fall back to a single full-extent block

    e2d = atomic_energies.reshape(k, 1).astype(x.dtype)
    grid = (pl.cdiv(n, tm),)

    itemsize = jnp.dtype(x.dtype).itemsize

    # --- Explicit scoped-VMEM budget --------------------------------------
    # Lane-/sublane-padded size of one pipeline stage; Pallas double-buffers
    # every operand.  (TM, 1) output blocks pad to (TM, 128) in VMEM.
    x_buf = _round_up(tm, 8) * _round_up(k, 128) * itemsize
    out_buf = _round_up(tm, 8) * 128 * 4
    e_buf = _round_up(k, 8) * 128 * itemsize
    vmem_bytes = 2 * (x_buf + out_buf + e_buf) + (4 << 20)  # + scratch headroom
    vmem_bytes = max(vmem_bytes, 32 << 20)  # harmless floor; <= v7x physical

    cost = pl.CostEstimate(
        flops=2 * n * k,
        transcendentals=0,
        bytes_accessed=n * k * itemsize + k * itemsize + n * 4,
    )

    out = pl.pallas_call(
        _atomic_energies_kernel,
        out_shape=jax.ShapeDtypeStruct((n, 1), jnp.float32),
        grid=grid,
        in_specs=[
            # Node tile: marches down the node axis (double-buffered DMA).
            pl.BlockSpec((tm, k), lambda i: (i, 0)),
            # Energy column: constant block index -> stays resident in VMEM.
            pl.BlockSpec((k, 1), lambda i: (0, 0)),
        ],
        out_specs=pl.BlockSpec((tm, 1), lambda i: (i, 0)),
        compiler_params=pltpu.CompilerParams(
            # Independent node tiles: megacore sharding where available,
            # harmless on single-TC chips.
            dimension_semantics=("parallel",),
            vmem_limit_bytes=int(vmem_bytes),
        ),
        cost_estimate=cost,
    )(x, e2d)

    return out.reshape(n)


if __name__ == "__main__":
    key = jax.random.PRNGKey(0)
    k_e, k_s, k_s2 = jax.random.split(key, 3)

    num_species = 118   # periodic table, as used by the module
    num_nodes = 16      # small demo batch of nodes

    # 1-D atomic energies, as in the PyTorch module (1-D register_buffer).
    atomic_energies = jax.random.normal(k_e, (num_species,), dtype=jnp.float32)

    # x as one-hot species encodings per node (typical MACE usage).
    species = jax.random.randint(k_s, (num_nodes,), 0, num_species)
    x = jax.nn.one_hot(species, num_species, dtype=jnp.float32)

    out = jax.block_until_ready(atomic_energies_forward(x, atomic_energies))
    ref = x @ atomic_energies
    assert out.shape == (num_nodes,)
    assert jnp.allclose(out, ref, atol=1e-5, rtol=1e-5)

    # Tiled path: ragged node count + non-multiple-of-8 user tile_m
    # (exercises the tile rounding fix and partial last blocks).
    n2 = 1000
    species2 = jax.random.randint(k_s2, (n2,), 0, num_species)
    x2 = jax.nn.one_hot(species2, num_species, dtype=jnp.float32)
    out2 = jax.block_until_ready(
        atomic_energies_forward(x2, atomic_energies, tile_m=200)
    )
    ref2 = x2 @ atomic_energies
    assert out2.shape == (n2,)
    assert jnp.allclose(out2, ref2, atol=1e-5, rtol=1e-5)

    print("KERNEL_OK")
</pallas_src>

<mosaic_0001>
module attributes {stable_mosaic.version = 11 : i64} {
  func.func @_atomic_energies_kernel(%arg0: i32, %arg1: memref<16x118xf32, #tpu.memory_space<vmem>>, %arg2: memref<118x1xf32, #tpu.memory_space<vmem>>, %arg3: memref<16x1xf32, #tpu.memory_space<vmem>>) attributes {dimension_semantics = [#tpu.dimension_semantics<parallel>], iteration_bounds = array<i64: 1>, scalar_prefetch = 0 : i64, scratch_operands = 0 : i64, tpu.core_type = #tpu.core_type<tc>, window_params = [{transform_indices = @transform_0, window_bounds = array<i64: 16, 118>}, {pipeline_mode = #tpu.pipeline_mode<synchronous>, transform_indices = @transform_1, window_bounds = array<i64: 118, 1>}, {transform_indices = @transform_2, window_bounds = array<i64: 16, 1>}]} {
    %c0 = arith.constant 0 : index
    %c0_0 = arith.constant 0 : index
    %0 = vector.load %arg1[%c0, %c0_0] : memref<16x118xf32, #tpu.memory_space<vmem>>, vector<16x118xf32>
    %c0_1 = arith.constant 0 : index
    %c0_2 = arith.constant 0 : index
    %1 = vector.load %arg2[%c0_1, %c0_2] : memref<118x1xf32, #tpu.memory_space<vmem>>, vector<118x1xf32>
    %cst = arith.constant dense<0.000000e+00> : vector<16x1xf32>
    %2 = tpu.matmul %0, %1, %cst {dimension_numbers = #tpu.dot_dimension_numbers<[1], [0], [0], [1], [0, 0, 1, 1], [], []>} : vector<16x118xf32>, vector<118x1xf32>, vector<16x1xf32> -> vector<16x1xf32>
    %c0_3 = arith.constant 0 : index
    %c0_4 = arith.constant 0 : index
    %3 = vector.load %arg3[%c0_3, %c0_4] : memref<16x1xf32, #tpu.memory_space<vmem>>, vector<16x1xf32>
    tpu.vector_store %arg3[%c0_3, %c0_4], %2 {strides = array<i32>} : memref<16x1xf32, #tpu.memory_space<vmem>>, vector<16x1xf32>,
    return
  }
  func.func @transform_0(%arg0: i32) -> (i32, i32) {
    %c0_i32 = arith.constant 0 : i32
    %c0_i32_0 = arith.constant 0 : i32
    return %arg0, %c0_i32 : i32, i32
  }
  func.func @transform_1(%arg0: i32) -> (i32, i32) {
    %c0_i32 = arith.constant 0 : i32
    %c0_i32_0 = arith.constant 0 : i32
    %c0_i32_1 = arith.constant 0 : i32
    return %c0_i32, %c0_i32_0 : i32, i32
  }
  func.func @transform_2(%arg0: i32) -> (i32, i32) {
    %c0_i32 = arith.constant 0 : i32
    %c0_i32_0 = arith.constant 0 : i32
    return %arg0, %c0_i32 : i32, i32
  }
}

</mosaic_0001>

<bundles_post_ra>
// kernel: tpu_custom_call.1
= control target key start
LH: loop header
LB: loop body
LE: loop exit
PB: predicated region body
PF: predicated region fallthrough
CT: control target
= control target key end

     0   :  { %vm35_vm0 = vcmask 1045504   ;;  %vm28_vm1 = vcmask 965632   ;;  %vm62_vm2 = vcmask 7168   ;;  %s159_s1 = inlined_call_operand.vmem [shape: f32[118,1], index: 1, kind: input, shape index: {}]   ;;  %s160_s0 = inlined_call_operand.vmem [shape: f32[16,118], index: 0, kind: input, shape index: {}]   ;;  %s161_s2 = inlined_call_operand.vmem [shape: f32[16,1], index: 2, kind: output, shape index: {}]  }
   0x1   :  { %v27_v0 = vld [vmem:[%s159_s1 + $0x70] sm:$0x3f]  ;;  %v26_v1 = vld [vmem:[%s159_s1 + $0x68] sm:$0xff]  ;;  %v25_v2 = vld [vmem:[%s159_s1 + $0x60] sm:$0xff] }
   0x2   :  { %69 = vmatpush.msk.msra.mxu0 %vm35_vm0, %v27_v0  ;;  %72 = vmatpush.msk.msra.mxu1 %vm35_vm0, %v27_v0  ;;  %v24_v3 = vld [vmem:[%s159_s1 + $0x58] sm:$0xff]  ;;  %v23_v4 = vld [vmem:[%s159_s1 + $0x50] sm:$0xff]  ;;  %v22_v5 = vld [vmem:[%s159_s1 + $0x48] sm:$0xff] }
   0x3   :  { %v21_v6 = vld [vmem:[%s159_s1 + $0x40] sm:$0xff]  ;;  %v20_v7 = vld [vmem:[%s159_s1 + $0x38] sm:$0xff]  ;;  %v19_v8 = vld [vmem:[%s159_s1 + $0x30] sm:$0xff] }
   0x4   :  { %41 = vmatpush.msra.mxu0 %v26_v1  ;;  %73 = vmatpush.msra.mxu1 %v26_v1  ;;  %v18_v9 = vld [vmem:[%s159_s1 + $0x28] sm:$0xff]  ;;  %v17_v10 = vld [vmem:[%s159_s1 + $0x20] sm:$0xff]  ;;  %v16_v11 = vld [vmem:[%s159_s1 + $0x18] sm:$0xff] }
   0x5   :  { %v15_v12 = vld [vmem:[%s159_s1 + $0x10] sm:$0xff]  ;;  %v14_v13 = vld [vmem:[%s159_s1 + $0x8] sm:$0xff]  ;;  %v13_v14 = vld [vmem:[%s159_s1] sm:$0xff] }
   0x6   :  { %42 = vmatpush.msra.mxu0 %v25_v2  ;;  %74 = vmatpush.msra.mxu1 %v25_v2  ;;  %v11_v15 = vld [vmem:[%s160_s0] sm:$0xff]  ;;  %v12_v16 = vld [vmem:[%s160_s0 + $0x8] sm:$0xff] }
   0x8   :  { %43 = vmatpush.msra.mxu0 %v24_v3  ;;  %75 = vmatpush.msra.mxu1 %v24_v3 }
   0xa   :  { %44 = vmatpush.msra.mxu0 %v23_v4  ;;  %76 = vmatpush.msra.mxu1 %v23_v4 }
   0xc   :  { %45 = vmatpush.msra.mxu0 %v22_v5  ;;  %77 = vmatpush.msra.mxu1 %v22_v5 }
   0xe   :  { %46 = vmatpush.msra.mxu0 %v21_v6  ;;  %78 = vmatpush.msra.mxu1 %v21_v6 }
  0x10   :  { %47 = vmatpush.msra.mxu0 %v20_v7  ;;  %79 = vmatpush.msra.mxu1 %v20_v7 }
  0x12   :  { %48 = vmatpush.msra.mxu0 %v19_v8  ;;  %80 = vmatpush.msra.mxu1 %v19_v8 }
  0x14   :  { %49 = vmatpush.msra.mxu0 %v18_v9  ;;  %81 = vmatpush.msra.mxu1 %v18_v9 }
  0x16   :  { %50 = vmatpush.msra.mxu0 %v17_v10  ;;  %82 = vmatpush.msra.mxu1 %v17_v10 }
  0x18   :  { %51 = vmatpush.msra.mxu0 %v16_v11  ;;  %83 = vmatpush.msra.mxu1 %v16_v11 }
  0x1a   :  { %52 = vmatpush.msra.mxu0 %v15_v12  ;;  %84 = vmatpush.msra.mxu1 %v15_v12 }
  0x1c   :  { %53 = vmatpush.msra.mxu0 %v14_v13  ;;  %85 = vmatpush.msra.mxu1 %v14_v13 }
  0x1e   :  { %54 = vmatpush.msra.mxu0 %v13_v14  ;;  %86 = vmatpush.msra.mxu1 %v13_v14 }
  0x1f   :  { %70 = vmatmul.msk.f32.vlgmr.msra.gmra.mxu0 %vm28_vm1, %v11_v15  ;;  %71 = vmatmul.msk.f32.vlgmr.msra.gmra.mxu1 %vm28_vm1, %v12_v16 }
  0x9c   :  { %v56_v17 = vpop.f32.mrf.mxu0  ;;  %v59_v18 = vpop.f32.mrf.mxu1 }
  0x9d   :  { %63 = vst.msk [vmem:[%s161_s2] sm:$0xff] %vm62_vm2, %v56_v17 }
  0x9e   :  { %64 = vst.msk [vmem:[%s161_s2 + $0x8] sm:$0xff] %vm62_vm2, %v59_v18 }

</bundles_post_ra>
